<compile_context>
chip_gen: v5e
topology: v5e:2x2
jax: 0.10.0
libtpu: 0.0.40
codegen_flags: <defaults>
</compile_context>

<pallas_src>
import functools

import jax
import jax.numpy as jnp
from jax import lax
from jax.experimental import pallas as pl
from jax.experimental.pallas import tpu as pltpu

LANES = 128
NEG = -1e30  # finite "−inf": avoids inf-inf NaNs in the shifted softmax


def _up8(x):
    return (x + 7) // 8 * 8


def _layout(D, H):
    """Row offsets (8-aligned) of each block inside the packed weight slab."""
    r_w1 = 0
    r_b1 = _up8(r_w1 + D)
    r_wg = _up8(r_b1 + 1)
    r_bg = _up8(r_wg + 2 * H)
    r_wh = _up8(r_bg + 1)
    r_bh = _up8(r_wh + H)
    rows = _up8(r_bh + 1)
    return dict(w1=r_w1, b1=r_b1, wg=r_wg, bg=r_bg, wh=r_wh, bh=r_bh, rows=rows)


def pack_params(params, D, H, A):
    """Pack the 10 raw tensors into one [rows, 128] f32 slab (single DMA)."""
    assert 4 * H <= LANES, "fused GRU gates need 4*H <= 128 lanes"
    assert A + 1 <= LANES and H <= LANES
    off = _layout(D, H)
    slab = jnp.zeros((off["rows"], LANES), jnp.float32)

    # trunk Linear(D->H)
    slab = slab.at[off["w1"]:off["w1"] + D, 0:H].set(params["w1"])
    slab = slab.at[off["b1"], 0:H].set(params["b1"].reshape(-1))

    # fused GRU weight [2H, 4H]; columns = (r | z | i_n | h_n)
    wih, whh = params["wih"], params["whh"]          # [H, 3H] each (r|z|n)
    bih = params["bih"].reshape(-1)
    bhh = params["bhh"].reshape(-1)
    Wg = jnp.zeros((2 * H, 4 * H), jnp.float32)
    Wg = Wg.at[0:H,       0:H].set(wih[:, 0:H])            # r (input part)
    Wg = Wg.at[H:2 * H,   0:H].set(whh[:, 0:H])            # r (hidden part)
    Wg = Wg.at[0:H,       H:2 * H].set(wih[:, H:2 * H])    # z (input part)
    Wg = Wg.at[H:2 * H,   H:2 * H].set(whh[:, H:2 * H])    # z (hidden part)
    Wg = Wg.at[0:H,       2 * H:3 * H].set(wih[:, 2 * H:3 * H])  # i_n only
    Wg = Wg.at[H:2 * H,   3 * H:4 * H].set(whh[:, 2 * H:3 * H])  # h_n only
    bg = jnp.concatenate([bih[0:H] + bhh[0:H],
                          bih[H:2 * H] + bhh[H:2 * H],
                          bih[2 * H:3 * H],
                          bhh[2 * H:3 * H]])
    slab = slab.at[off["wg"]:off["wg"] + 2 * H, 0:4 * H].set(Wg)
    slab = slab.at[off["bg"], 0:4 * H].set(bg)

    # fused heads [H, 128]: cols 0:A = policy, col A = value, rest zero
    slab = slab.at[off["wh"]:off["wh"] + H, 0:A].set(params["wp"])
    slab = slab.at[off["wh"]:off["wh"] + H, A].set(params["wv"].reshape(-1))
    slab = slab.at[off["bh"], 0:A].set(params["bp"].reshape(-1))
    slab = slab.at[off["bh"], A].set(params["bv"].reshape(-1)[0])
    return slab


def a2c_forward_kernel(state_ref, hx_ref, gumbel_ref, w_ref,
                       stats_ref, hx_out_ref, *, D, H, A, off):
    x = state_ref[...]                              # [B, D]
    h = hx_ref[...]                                 # [B, H]
    B = x.shape[0]

    # ---- shared trunk: Linear + ReLU --------------------------------------
    w1 = w_ref[off["w1"]:off["w1"] + D, :]          # [D, 128] (cols >= H are 0)
    b1 = w_ref[off["b1"]:off["b1"] + 1, :]          # [1, 128]
    f1 = jnp.maximum(
        jnp.dot(x, w1, preferred_element_type=jnp.float32) + b1, 0.0)
    f1 = f1[:, 0:H]                                 # [B, H]

    # ---- GRU cell, single fused matmul (cols: r | z | i_n | h_n) ----------
    wg = w_ref[off["wg"]:off["wg"] + 2 * H, :]      # [2H, 128]
    bg = w_ref[off["bg"]:off["bg"] + 1, :]          # [1, 128]
    xc = jnp.concatenate([f1, h], axis=-1)          # [B, 2H]
    g = jnp.dot(xc, wg, preferred_element_type=jnp.float32) + bg  # [B, 128]

    r = jax.nn.sigmoid(g[:, 0:H])
    z = jax.nn.sigmoid(g[:, H:2 * H])
    i_n = g[:, 2 * H:3 * H]
    h_n = g[:, 3 * H:4 * H]
    n = jnp.tanh(i_n + r * h_n)
    h_new = (1.0 - z) * n + z * h                   # [B, H]
    hx_out_ref[...] = h_new

    # ---- fused policy + value heads ---------------------------------------
    wh = w_ref[off["wh"]:off["wh"] + H, :]          # [H, 128]
    bh = w_ref[off["bh"]:off["bh"] + 1, :]          # [1, 128]
    head = jnp.dot(h_new, wh, preferred_element_type=jnp.float32) + bh  # [B,128]

    col = lax.broadcasted_iota(jnp.int32, (B, LANES), 1)
    value = jnp.sum(jnp.where(col == A, head, 0.0), axis=-1, keepdims=True)
    logits = jnp.where(col < A, head, NEG)          # mask value col + padding

    # ---- categorical: log-softmax / entropy --------------------------------
    m = jnp.max(logits, axis=-1, keepdims=True)
    shifted = logits - m
    sumexp = jnp.sum(jnp.exp(shifted), axis=-1, keepdims=True)
    log_probs = shifted - jnp.log(sumexp)
    probs = jnp.exp(log_probs)                      # padded lanes -> exactly 0
    entropy = -jnp.sum(probs * log_probs, axis=-1, keepdims=True)

    # ---- Gumbel-max sampling ------------------------------------------------
    perturbed = logits + gumbel_ref[...]            # padded lanes stay ~ -1e30
    pmax = jnp.max(perturbed, axis=-1, keepdims=True)
    action = jnp.min(jnp.where(perturbed == pmax, col, LANES),
                     axis=-1, keepdims=True)        # [B,1] i32, first max index
    one_hot = (col == action).astype(jnp.float32)
    log_prob = jnp.sum(one_hot * log_probs, axis=-1, keepdims=True)
    act_f = action.astype(jnp.float32)              # exact for 0..A-1

    # ---- single lane-dense stats slab: lp | value | entropy | action -------
    stats = jnp.where(col == 0, log_prob,
            jnp.where(col == 1, value,
            jnp.where(col == 2, entropy,
            jnp.where(col == 3, act_f, 0.0))))
    stats_ref[...] = stats


@jax.jit
def a2c_forward(state, hx, gumbel, w_slab):
    B, D = state.shape
    H = hx.shape[-1]
    A = gumbel.shape[-1]
    off = _layout(D, H)
    assert w_slab.shape == (off["rows"], LANES)

    gumbel_padded = jnp.pad(gumbel, ((0, 0), (0, LANES - A)))   # zeros past A

    vmem = pl.BlockSpec(memory_space=pltpu.MemorySpace.VMEM)
    stats, hx_new = pl.pallas_call(
        functools.partial(a2c_forward_kernel, D=D, H=H, A=A, off=off),
        out_shape=(
            jax.ShapeDtypeStruct((B, LANES), jnp.float32),  # packed stats
            jax.ShapeDtypeStruct((B, H), jnp.float32),      # gru_hx
        ),
        in_specs=[vmem, vmem, vmem, vmem],
        out_specs=(vmem, vmem),
    )(state, hx, gumbel_padded, w_slab)

    action = stats[:, 3].astype(jnp.int32)
    log_prob = stats[:, 0]
    value = stats[:, 1:2]
    entropy = stats[:, 2]
    return action, log_prob, value, entropy, hx_new


def init_params(key, in_dim, hidden, n_actions):
    """Deterministic synthetic init (stand-in for the torch network weights)."""
    ks = jax.random.split(key, 10)
    s = 0.1
    return {
        "w1":  s * jax.random.normal(ks[0], (in_dim, hidden), jnp.float32),
        "b1":  jnp.zeros((1, hidden), jnp.float32),
        "wih": s * jax.random.normal(ks[1], (hidden, 3 * hidden), jnp.float32),
        "bih": jnp.zeros((1, 3 * hidden), jnp.float32),
        "whh": s * jax.random.normal(ks[2], (hidden, 3 * hidden), jnp.float32),
        "bhh": jnp.zeros((1, 3 * hidden), jnp.float32),
        "wp":  s * jax.random.normal(ks[3], (hidden, n_actions), jnp.float32),
        "bp":  jnp.zeros((1, n_actions), jnp.float32),
        "wv":  s * jax.random.normal(ks[4], (hidden, 1), jnp.float32),
        "bv":  jnp.zeros((1, 1), jnp.float32),
    }


def a2c_reference(state, hx, gumbel, params):
    """Pure-JAX reference of the unfused forward (validates the packing)."""
    hi = lax.Precision.HIGHEST
    H = hx.shape[-1]
    f1 = jnp.maximum(jnp.dot(state, params["w1"], precision=hi) + params["b1"], 0.0)
    gi = jnp.dot(f1, params["wih"], precision=hi) + params["bih"]
    gh = jnp.dot(hx, params["whh"], precision=hi) + params["bhh"]
    r = jax.nn.sigmoid(gi[:, 0:H] + gh[:, 0:H])
    z = jax.nn.sigmoid(gi[:, H:2 * H] + gh[:, H:2 * H])
    n = jnp.tanh(gi[:, 2 * H:] + r * gh[:, 2 * H:])
    h_new = (1.0 - z) * n + z * hx
    logits = jnp.dot(h_new, params["wp"], precision=hi) + params["bp"]
    value = jnp.dot(h_new, params["wv"], precision=hi) + params["bv"]
    log_probs = jax.nn.log_softmax(logits, axis=-1)
    probs = jnp.exp(log_probs)
    entropy = -jnp.sum(probs * log_probs, axis=-1)
    return log_probs, value, entropy, h_new


if __name__ == "__main__":
    B, D, H, A = 8, 16, 32, 6   # batch (nenv), state features, hidden_size, n_actions

    key = jax.random.PRNGKey(0)
    k_state, k_param, k_sample = jax.random.split(key, 3)

    state = jax.random.normal(k_state, (B, D), jnp.float32)
    hx = jnp.zeros((B, H), jnp.float32)       # torch.zeros(nenv, hidden_size)
    params = init_params(k_param, D, H, A)
    w_slab = pack_params(params, D, H, A)     # one [136,128] f32 slab (~68 KB)

    # Gumbel noise for exact Categorical(logits=...) sampling via Gumbel-max.
    u = jax.random.uniform(k_sample, (B, A), jnp.float32,
                           minval=1e-6, maxval=1.0 - 1e-6)
    gumbel = -jnp.log(-jnp.log(u))

    action, log_prob, value, entropy, gru_hx = a2c_forward(state, hx, gumbel, w_slab)
    jax.block_until_ready((action, log_prob, value, entropy, gru_hx))

    # shape / dtype checks (what the torch forward would return)
    assert action.shape == (B,) and action.dtype == jnp.int32
    assert log_prob.shape == (B,) and value.shape == (B, 1)
    assert entropy.shape == (B,) and gru_hx.shape == (B, H)
    assert bool(jnp.all((action >= 0) & (action < A)))

    # numerical check against the unfused pure-JAX reference
    ref_lp_full, ref_value, ref_entropy, ref_h = a2c_reference(state, hx, gumbel, params)
    ref_lp_at_action = jnp.take_along_axis(ref_lp_full, action[:, None], axis=-1)[:, 0]
    assert bool(jnp.allclose(gru_hx, ref_h, atol=2e-3, rtol=1e-3))
    assert bool(jnp.allclose(value, ref_value, atol=2e-3, rtol=1e-3))
    assert bool(jnp.allclose(entropy, ref_entropy, atol=2e-3, rtol=1e-3))
    assert bool(jnp.allclose(log_prob, ref_lp_at_action, atol=2e-3, rtol=1e-3))

    print("KERNEL_OK")
</pallas_src>

<mosaic_0001>
module attributes {stable_mosaic.version = 11 : i64} {
  func.func @a2c_forward_kernel(%arg0: memref<8x16xf32, #tpu.memory_space<vmem>>, %arg1: memref<8x32xf32, #tpu.memory_space<vmem>>, %arg2: memref<8x128xf32, #tpu.memory_space<vmem>>, %arg3: memref<136x128xf32, #tpu.memory_space<vmem>>, %arg4: memref<8x128xf32, #tpu.memory_space<vmem>>, %arg5: memref<8x32xf32, #tpu.memory_space<vmem>>) attributes {dimension_semantics = [], scalar_prefetch = 0 : i64, scratch_operands = 0 : i64, tpu.core_type = #tpu.core_type<tc>} {
    %c0 = arith.constant 0 : index
    %c0_0 = arith.constant 0 : index
    %0 = vector.load %arg0[%c0, %c0_0] : memref<8x16xf32, #tpu.memory_space<vmem>>, vector<8x16xf32>
    %c0_1 = arith.constant 0 : index
    %c0_2 = arith.constant 0 : index
    %1 = vector.load %arg1[%c0_1, %c0_2] : memref<8x32xf32, #tpu.memory_space<vmem>>, vector<8x32xf32>
    %c0_3 = arith.constant 0 : index
    %c0_4 = arith.constant 0 : index
    %2 = vector.load %arg3[%c0_3, %c0_4] : memref<136x128xf32, #tpu.memory_space<vmem>>, vector<16x128xf32>
    %c16 = arith.constant 16 : index
    %c0_5 = arith.constant 0 : index
    %3 = vector.load %arg3[%c16, %c0_5] : memref<136x128xf32, #tpu.memory_space<vmem>>, vector<1x128xf32>
    %cst = arith.constant dense<0.000000e+00> : vector<8x128xf32>
    %4 = tpu.matmul %0, %2, %cst {dimension_numbers = #tpu.dot_dimension_numbers<[1], [0], [0], [1], [0, 0, 1, 1], [], []>} : vector<8x16xf32>, vector<16x128xf32>, vector<8x128xf32> -> vector<8x128xf32>
    %5 = vector.broadcast %3 : vector<1x128xf32> to vector<8x128xf32>
    %6 = arith.addf %4, %5 : vector<8x128xf32>
    %cst_6 = arith.constant 0.000000e+00 : f32
    %7 = vector.broadcast %cst_6 : f32 to vector<8x128xf32>
    %8 = arith.maximumf %6, %7 : vector<8x128xf32>
    %9 = vector.extract_strided_slice %8 {offsets = [0, 0], sizes = [8, 32], strides = [1, 1]} : vector<8x128xf32> to vector<8x32xf32>
    %c24 = arith.constant 24 : index
    %c0_7 = arith.constant 0 : index
    %10 = vector.load %arg3[%c24, %c0_7] : memref<136x128xf32, #tpu.memory_space<vmem>>, vector<64x128xf32>
    %c88 = arith.constant 88 : index
    %c0_8 = arith.constant 0 : index
    %11 = vector.load %arg3[%c88, %c0_8] : memref<136x128xf32, #tpu.memory_space<vmem>>, vector<1x128xf32>
    %12 = tpu.concatenate %9, %1 in 1 : vector<8x32xf32>, vector<8x32xf32> -> vector<8x64xf32>
    %cst_9 = arith.constant dense<0.000000e+00> : vector<8x128xf32>
    %13 = tpu.matmul %12, %10, %cst_9 {dimension_numbers = #tpu.dot_dimension_numbers<[1], [0], [0], [1], [0, 0, 1, 1], [], []>} : vector<8x64xf32>, vector<64x128xf32>, vector<8x128xf32> -> vector<8x128xf32>
    %14 = vector.broadcast %11 : vector<1x128xf32> to vector<8x128xf32>
    %15 = arith.addf %13, %14 : vector<8x128xf32>
    %16 = vector.extract_strided_slice %15 {offsets = [0, 0], sizes = [8, 32], strides = [1, 1]} : vector<8x128xf32> to vector<8x32xf32>
    %17 = arith.negf %16 : vector<8x32xf32>
    %18 = math.exp %17 : vector<8x32xf32>
    %cst_10 = arith.constant 1.000000e+00 : f32
    %19 = vector.broadcast %cst_10 : f32 to vector<8x32xf32>
    %20 = arith.addf %19, %18 : vector<8x32xf32>
    %21 = arith.divf %19, %20 : vector<8x32xf32>
    %22 = vector.extract_strided_slice %15 {offsets = [0, 32], sizes = [8, 32], strides = [1, 1]} : vector<8x128xf32> to vector<8x32xf32>
    %23 = arith.negf %22 : vector<8x32xf32>
    %24 = math.exp %23 : vector<8x32xf32>
    %cst_11 = arith.constant 1.000000e+00 : f32
    %25 = vector.broadcast %cst_11 : f32 to vector<8x32xf32>
    %26 = arith.addf %25, %24 : vector<8x32xf32>
    %27 = arith.divf %25, %26 : vector<8x32xf32>
    %28 = vector.extract_strided_slice %15 {offsets = [0, 64], sizes = [8, 32], strides = [1, 1]} : vector<8x128xf32> to vector<8x32xf32>
    %29 = vector.extract_strided_slice %15 {offsets = [0, 96], sizes = [8, 32], strides = [1, 1]} : vector<8x128xf32> to vector<8x32xf32>
    %30 = arith.mulf %21, %29 : vector<8x32xf32>
    %31 = arith.addf %28, %30 : vector<8x32xf32>
    %32 = math.tanh %31 : vector<8x32xf32>
    %cst_12 = arith.constant 1.000000e+00 : f32
    %33 = vector.broadcast %cst_12 : f32 to vector<8x32xf32>
    %34 = arith.subf %33, %27 : vector<8x32xf32>
    %35 = arith.mulf %34, %32 : vector<8x32xf32>
    %36 = arith.mulf %27, %1 : vector<8x32xf32>
    %37 = arith.addf %35, %36 : vector<8x32xf32>
    %c0_13 = arith.constant 0 : index
    %c0_14 = arith.constant 0 : index
    %38 = vector.load %arg5[%c0_13, %c0_14] : memref<8x32xf32, #tpu.memory_space<vmem>>, vector<8x32xf32>
    tpu.vector_store %arg5[%c0_13, %c0_14], %37 {strides = array<i32>} : memref<8x32xf32, #tpu.memory_space<vmem>>, vector<8x32xf32>,
    %c96 = arith.constant 96 : index
    %c0_15 = arith.constant 0 : index
    %39 = vector.load %arg3[%c96, %c0_15] : memref<136x128xf32, #tpu.memory_space<vmem>>, vector<32x128xf32>
    %c128 = arith.constant 128 : index
    %c0_16 = arith.constant 0 : index
    %40 = vector.load %arg3[%c128, %c0_16] : memref<136x128xf32, #tpu.memory_space<vmem>>, vector<1x128xf32>
    %cst_17 = arith.constant dense<0.000000e+00> : vector<8x128xf32>
    %41 = tpu.matmul %37, %39, %cst_17 {dimension_numbers = #tpu.dot_dimension_numbers<[1], [0], [0], [1], [0, 0, 1, 1], [], []>} : vector<8x32xf32>, vector<32x128xf32>, vector<8x128xf32> -> vector<8x128xf32>
    %42 = vector.broadcast %40 : vector<1x128xf32> to vector<8x128xf32>
    %43 = arith.addf %41, %42 : vector<8x128xf32>
    %44 = tpu.iota {dimensions = array<i32: 1>} : vector<8x128xi32>
    %c6_i32 = arith.constant 6 : i32
    %45 = vector.broadcast %c6_i32 : i32 to vector<8x128xi32>
    %46 = arith.cmpi eq, %44, %45 : vector<8x128xi32>
    %cst_18 = arith.constant 0.000000e+00 : f32
    %47 = vector.broadcast %cst_18 : f32 to vector<8x128xf32>
    %48 = arith.select %46, %43, %47 : vector<8x128xi1>, vector<8x128xf32>
    %cst_19 = arith.constant dense<0.000000e+00> : vector<8xf32>
    %49 = vector.multi_reduction <add>, %48, %cst_19 [1] : vector<8x128xf32> to vector<8xf32>
    %50 = vector.shape_cast %49 : vector<8xf32> to vector<8x1xf32>
    %c6_i32_20 = arith.constant 6 : i32
    %51 = vector.broadcast %c6_i32_20 : i32 to vector<8x128xi32>
    %52 = arith.cmpi slt, %44, %51 : vector<8x128xi32>
    %cst_21 = arith.constant -1.000000e+30 : f32
    %53 = vector.broadcast %cst_21 : f32 to vector<8x128xf32>
    %54 = arith.select %52, %43, %53 : vector<8x128xi1>, vector<8x128xf32>
    %cst_22 = arith.constant dense<0xFF800000> : vector<8xf32>
    %55 = vector.multi_reduction <maximumf>, %54, %cst_22 [1] : vector<8x128xf32> to vector<8xf32>
    %56 = vector.shape_cast %55 : vector<8xf32> to vector<8x1xf32>
    %57 = vector.broadcast %56 : vector<8x1xf32> to vector<8x128xf32>
    %58 = arith.subf %54, %57 : vector<8x128xf32>
    %59 = math.exp %58 : vector<8x128xf32>
    %cst_23 = arith.constant dense<0.000000e+00> : vector<8xf32>
    %60 = vector.multi_reduction <add>, %59, %cst_23 [1] : vector<8x128xf32> to vector<8xf32>
    %61 = vector.shape_cast %60 : vector<8xf32> to vector<8x1xf32>
    %62 = math.log %61 : vector<8x1xf32>
    %63 = vector.broadcast %62 : vector<8x1xf32> to vector<8x128xf32>
    %64 = arith.subf %58, %63 : vector<8x128xf32>
    %65 = math.exp %64 : vector<8x128xf32>
    %66 = arith.mulf %65, %64 : vector<8x128xf32>
    %cst_24 = arith.constant dense<0.000000e+00> : vector<8xf32>
    %67 = vector.multi_reduction <add>, %66, %cst_24 [1] : vector<8x128xf32> to vector<8xf32>
    %68 = vector.shape_cast %67 : vector<8xf32> to vector<8x1xf32>
    %cst_25 = arith.constant 0.000000e+00 : f32
    %69 = vector.broadcast %cst_25 : f32 to vector<8x1xf32>
    %70 = arith.subf %69, %68 : vector<8x1xf32>
    %c0_26 = arith.constant 0 : index
    %c0_27 = arith.constant 0 : index
    %71 = vector.load %arg2[%c0_26, %c0_27] : memref<8x128xf32, #tpu.memory_space<vmem>>, vector<8x128xf32>
    %72 = arith.addf %54, %71 : vector<8x128xf32>
    %cst_28 = arith.constant dense<0xFF800000> : vector<8xf32>
    %73 = vector.multi_reduction <maximumf>, %72, %cst_28 [1] : vector<8x128xf32> to vector<8xf32>
    %74 = vector.shape_cast %73 : vector<8xf32> to vector<8x1xf32>
    %75 = vector.broadcast %74 : vector<8x1xf32> to vector<8x128xf32>
    %76 = arith.cmpf oeq, %72, %75 : vector<8x128xf32>
    %c128_i32 = arith.constant 128 : i32
    %77 = vector.broadcast %c128_i32 : i32 to vector<8x128xi32>
    %78 = arith.select %76, %44, %77 : vector<8x128xi1>, vector<8x128xi32>
    %cst_29 = arith.constant dense<2147483647> : vector<8xi32>
    %79 = vector.multi_reduction <minsi>, %78, %cst_29 [1] : vector<8x128xi32> to vector<8xi32>
    %80 = vector.shape_cast %79 : vector<8xi32> to vector<8x1xi32>
    %81 = vector.broadcast %80 : vector<8x1xi32> to vector<8x128xi32>
    %82 = arith.cmpi eq, %44, %81 : vector<8x128xi32>
    %83 = arith.extui %82 : vector<8x128xi1> to vector<8x128xi32>
    %84 = arith.sitofp %83 : vector<8x128xi32> to vector<8x128xf32>
    %85 = arith.mulf %84, %64 : vector<8x128xf32>
    %cst_30 = arith.constant dense<0.000000e+00> : vector<8xf32>
    %86 = vector.multi_reduction <add>, %85, %cst_30 [1] : vector<8x128xf32> to vector<8xf32>
    %87 = vector.shape_cast %86 : vector<8xf32> to vector<8x1xf32>
    %88 = arith.sitofp %80 : vector<8x1xi32> to vector<8x1xf32>
    %c0_i32 = arith.constant 0 : i32
    %89 = vector.broadcast %c0_i32 : i32 to vector<8x128xi32>
    %90 = arith.cmpi eq, %44, %89 : vector<8x128xi32>
    %c1_i32 = arith.constant 1 : i32
    %91 = vector.broadcast %c1_i32 : i32 to vector<8x128xi32>
    %92 = arith.cmpi eq, %44, %91 : vector<8x128xi32>
    %c2_i32 = arith.constant 2 : i32
    %93 = vector.broadcast %c2_i32 : i32 to vector<8x128xi32>
    %94 = arith.cmpi eq, %44, %93 : vector<8x128xi32>
    %c3_i32 = arith.constant 3 : i32
    %95 = vector.broadcast %c3_i32 : i32 to vector<8x128xi32>
    %96 = arith.cmpi eq, %44, %95 : vector<8x128xi32>
    %cst_31 = arith.constant 0.000000e+00 : f32
    %97 = vector.shape_cast %88 : vector<8x1xf32> to vector<8x1xf32>
    %98 = vector.broadcast %97 : vector<8x1xf32> to vector<8x128xf32>
    %99 = vector.broadcast %cst_31 : f32 to vector<8x128xf32>
    %100 = arith.select %96, %98, %99 : vector<8x128xi1>, vector<8x128xf32>
    %101 = vector.shape_cast %70 : vector<8x1xf32> to vector<8x1xf32>
    %102 = vector.broadcast %101 : vector<8x1xf32> to vector<8x128xf32>
    %103 = arith.select %94, %102, %100 : vector<8x128xi1>, vector<8x128xf32>
    %104 = vector.shape_cast %50 : vector<8x1xf32> to vector<8x1xf32>
    %105 = vector.broadcast %104 : vector<8x1xf32> to vector<8x128xf32>
    %106 = arith.select %92, %105, %103 : vector<8x128xi1>, vector<8x128xf32>
    %107 = vector.shape_cast %87 : vector<8x1xf32> to vector<8x1xf32>
    %108 = vector.broadcast %107 : vector<8x1xf32> to vector<8x128xf32>
    %109 = arith.select %90, %108, %106 : vector<8x128xi1>, vector<8x128xf32>
    %c0_32 = arith.constant 0 : index
    %c0_33 = arith.constant 0 : index
    %110 = vector.load %arg4[%c0_32, %c0_33] : memref<8x128xf32, #tpu.memory_space<vmem>>, vector<8x128xf32>
    tpu.vector_store %arg4[%c0_32, %c0_33], %109 {strides = array<i32>} : memref<8x128xf32, #tpu.memory_space<vmem>>, vector<8x128xf32>,
    return
  }
}

</mosaic_0001>

<bundles_post_ra>
// kernel: a2c_forward.1
= control target key start
LH: loop header
LB: loop body
LE: loop exit
PB: predicated region body
PF: predicated region fallthrough
CT: control target
= control target key end

     0   :  { %11 = vsyncpa [#allocation3], 0  ;;  %s408_s0 = inlined_call_operand.vmem [shape: f32[8,16], index: 0, kind: input, shape index: {}]   ;;  %s409_s1 = inlined_call_operand.vmem [shape: f32[8,32], index: 1, kind: input, shape index: {}]   ;;  %s410_s2 = inlined_call_operand.vmem [shape: f32[8,128], index: 2, kind: input, shape index: {}]   ;;  %s411_s3 = inlined_call_operand.hbm [shape: f32[136,128], index: 3, kind: input, shape index: {}]   ;;  %s412_s4 = inlined_call_operand.vmem [shape: f32[8,128], index: 4, kind: output, shape index: {0}]   ;;  %s413_s5 = inlined_call_operand.hbm [shape: f32[8,32], index: 5, kind: output, shape index: {1}]  }
   0x1   :  { %12 = vsyncpa [#allocation4], 0  ;;  %s23_s20 = sshll.u32 %s411_s3, 4  ;;  %s339_s21 = smov [#allocation2]   ;;  %s24_s20 = int_to_ptr.hbm [resolvable:$true] %s23_s20 }
   0x2   :  { %s25_s22 = sshll.u32 %s339_s21, 4  ;;  %s340_s23 = smov 128   ;;  %s26_s22 = int_to_ptr.vmem [resolvable:$true] %s25_s22 }
   0x3   :  { %s341_s24 = smov 8  }
   0x4   :  { %31 = dma.hbm_to_vmem [thread:$0]  %s24_s20, 2176, %s26_s22, [#allocation3], %s340_s23, %s340_s23, %s341_s24  }
   0x5   :  { %335 = dma.done.wait [#allocation3], 2176  }
   0x6   :  { %336 = vsyncadd [#allocation3], 4294965120  ;;  %v39_v0 = vld [vmem:[#allocation2 + $0x8] sm:$0xff]  ;;  %v38_v1 = vld [vmem:[#allocation2] sm:$0xff]  ;;  %vm42_vm0 = vcmask 130048   ;;  %s342_s3 = smov 32   ;;  %v178_v49 = vlaneseq }
   0x7   :  { %v36_v2 = vld [vmem:[%s408_s0] sm:$0xff]  ;;  %60 = vmatpush.msra.mxu0 %v39_v0  ;;  %v74_v4 = vld [vmem:[#allocation2 + $0x50] sm:$0xff]  ;;  %v73_v5 = vld [vmem:[#allocation2 + $0x48] sm:$0xff]  ;;  %vm80_vm1 = vcmask 261120   ;;  %vm83_vm2 = vcmask 523264   ;;  %s343_s0 = smov 64  }
   0x8   :  { %v37_v3 = vld [vmem:[%s409_s1] sm:$0xff]  ;;  %95 = vmatpush.msra.mxu1 %v74_v4  ;;  %v71_v7 = vld [vmem:[#allocation2 + $0x38] sm:$0xff]  ;;  %v70_v8 = vld [vmem:[#allocation2 + $0x30] sm:$0xff]  ;;  %s344_s1 = smov 96   ;;  %v389_v50 = vand.u32 127, %v178_v49  ;;  %s247_s9 = sshll.u32 %s413_s5, 4  ;;  %s248_s9 = int_to_ptr.hbm [resolvable:$true] %s247_s9 }
   0x9   :  { %77 = vrot.lane.b32.xlu0 %v37_v3, %s342_s3  ;;  %61 = vmatpush.msra.mxu0 %v38_v1  ;;  %v72_v6 = vld [vmem:[#allocation2 + $0x40] sm:$0xff]  ;;  %v69_v9 = vld [vmem:[#allocation2 + $0x28] sm:$0xff]  ;;  %v67_v11 = vld [vmem:[#allocation2 + $0x18] sm:$0xff] }
   0xa   :  { %259 = vmatmul.msk.f32.vlgmr.msra.gmra.mxu0 %vm42_vm0, %v36_v2  ;;  %96 = vmatpush.msra.mxu1 %v73_v5  ;;  %v68_v10 = vld [vmem:[#allocation2 + $0x20] sm:$0xff]  ;;  %v272_v12 = vld [vmem:[#allocation2 + $0x10] ss:$0 sm:$0xff]  ;;  %v273_v18 = vld [vmem:[#allocation2 + $0x58] ss:$0 sm:$0xff]  ;;  %vm184_vm7 = vcmp.lt.s32.totalorder %v389_v50, 6 }
   0xb   :  { %v153_v39 = vld [vmem:[#allocation2 + $0x78] sm:$0xff]  ;;  %v152_v40 = vld [vmem:[#allocation2 + $0x70] sm:$0xff]  ;;  %v151_v41 = vld [vmem:[#allocation2 + $0x68] sm:$0xff]  ;;  %vm180_vm9 = vcmp.eq.s32.totalorder %v389_v50, 6  ;;  %vm232_vm12 = vcmp.eq.s32.totalorder %v389_v50, 3  ;;  %vm231_vm13 = vcmp.eq.s32.totalorder %v389_v50, 2 }
   0xc   :  { %97 = vmatpush.msra.mxu1 %v72_v6  ;;  %170 = vmatpush.msra.mxu2 %v153_v39  ;;  %v150_v42 = vld [vmem:[#allocation2 + $0x60] sm:$0xff]  ;;  %vm230_vm14 = vcmp.eq.s32.totalorder %v389_v50, 1  ;;  %vm229_vm15 = vcmp.eq.s32.totalorder %v389_v50, 0 }
   0xd   :  { %v274_v51 = vld [vmem:[#allocation2 + $0x80] ss:$0 sm:$0xff] }
   0xe   :  { %98 = vmatpush.msra.mxu1 %v71_v7  ;;  %171 = vmatpush.msra.mxu2 %v152_v40  ;;  %v202_v54 = vld [vmem:[%s410_s2] sm:$0xff]  ;;  %s345_s2 = smov [#allocation5]  }
   0xf   :  { %s245_s6 = sshll.u32 %s345_s2, 4  ;;  %s246_s6 = int_to_ptr.vmem [resolvable:$true] %s245_s6 }
  0x10   :  { %99 = vmatpush.msra.mxu1 %v70_v8  ;;  %172 = vmatpush.msra.mxu2 %v151_v41 }
  0x12   :  { %100 = vmatpush.msra.mxu1 %v69_v9  ;;  %173 = vmatpush.msra.mxu2 %v150_v42 }
  0x14   :  { %101 = vmatpush.msra.mxu1 %v68_v10 }
  0x16   :  { %102 = vmatpush.msra.mxu1 %v67_v11 }
  0x7b   :  { %v78_v15 = vpop.permute.xlu0 %77 }
  0x87   :  { %v63_v13 = vpop.f32.mrf.mxu0 }
  0x88   :  { %v64_v14 = vadd.f32 %v272_v12, %v63_v13 }
  0x8a   :  { %v66_v16 = vmax.f32 %v64_v14, 0.0 }
  0x8c   :  { %v81_v17 = vsel %vm80_vm1, %v66_v16, %v78_v15 }
  0x8d   :  { %260 = vmatmul.msk.f32.vlgmr.msra.gmra.mxu1 %vm83_vm2, %v81_v17 }
 0x10a   :  { %v104_v19 = vpop.f32.mrf.mxu1 }
 0x10b   :  { %v105_v20 = vadd.f32 %v273_v18, %v104_v19  ;;  %v346_v18 = vmov 0.0  }
 0x10d   :  { %127 = vrot.lane.b32.xlu0 %v105_v20, %s342_s3  ;;  %v261_v21 = vmul.f32 -1.442695, %v105_v20 }
 0x10f   :  { %275 = vpow2.f32 %v261_v21 }
 0x115   :  { %v276_v22 = vpop.eup %275 }
 0x116   :  { %v110_v23 = vadd.f32 1.0, %v276_v22 }
 0x118   :  { %277 = vrcp.f32 %v110_v23  ;;  %v122_v29 = vand.u32 2147483648, %v110_v23  ;;  %vm116_vm4 = vweird.f32 %v110_v23  ;;  %v120_v30 = vand.u32 2147483647, %v110_v23 }
 0x11a   :  { %v123_v32 = vor.u32 1.1754944e-38, %v122_v29  ;;  %vm121_vm6 = vcmp.eq.f32.partialorder %v120_v30, 8.507059e+37 }
 0x11e   :  { %v278_v24 = vpop.eup %277 }
 0x11f   :  { %v112_v25 = vmul.f32 %v278_v24, %v110_v23  ;;  %vm117_vm3 = vweird.f32 %v278_v24 }
 0x120   :  { %vm118_vm5 = vmor %vm116_vm4, %vm117_vm3 }
 0x121   :  { %v113_v26 = vsub.f32 1.0, %v112_v25 }
 0x123   :  { %v114_v27 = vmul.f32 %v278_v24, %v113_v26 }
 0x125   :  { %v115_v28 = vadd.f32 %v278_v24, %v114_v27 }
 0x127   :  { %v119_v31 = vsel %vm118_vm5, %v278_v24, %v115_v28 }
 0x128   :  { %v124_v34 = vsel %vm121_vm6, %v123_v32, %v119_v31 }
 0x129   :  { %v137_v43 = vsub.f32 1.0, %v124_v34  ;;  %v143_v46 = vmul.f32 %v124_v34, %v78_v15 }
 0x17f   :  { %v128_v33 = vpop.permute.xlu0 %127 }
 0x180   :  { %v130_v35 = vmul.f32 %v128_v33, %v124_v34 }
 0x182   :  { %132 = vrot.lane.b32.xlu1 %v130_v35, %s343_s0 }
 0x1f4   :  { %v133_v36 = vpop.permute.xlu1 %132 }
 0x1f5   :  { %v135_v37 = vadd.f32 %v133_v36, %v105_v20 }
 0x1f7   :  { %279 = vtanh.f32 %v135_v37 }
 0x1fd   :  { %v280_v38 = vpop.eup %279 }
 0x1fe   :  { %139 = vrot.lane.b32.xlu1 %v280_v38, %s344_s1 }
 0x270   :  { %v140_v44 = vpop.permute.xlu1 %139 }
 0x271   :  { %v142_v45 = vmul.f32 %v140_v44, %v137_v43 }
 0x273   :  { %v144_v47 = vadd.f32 %v143_v46, %v142_v45 }
 0x275   :  { %146 = vrot.lane.b32.xlu2 %v144_v47, %s344_s1 }
 0x2cf   :  { %v147_v48 = vpop.permute.xlu2 %146 }
 0x2d0   :  { %149 = vst.msk [vmem:[#allocation5] sm:$0xff] %vm80_vm1, %v147_v48  ;;  %262 = vmatmul.msk.f32.vlgmr.msra.gmra.mxu2 %vm80_vm1, %v147_v48 }
 0x2d1   :  { %250 = dma.vmem_to_hbm [thread:$0]  %s246_s6, 128, %s248_s9, [#allocation4]  }
 0x353   :  { %v175_v52 = vpop.f32.mrf.mxu2 }
 0x354   :  { %v176_v53 = vadd.f32 %v274_v51, %v175_v52 }
 0x356   :  { %v185_v55 = vsel %vm184_vm7, %v176_v53, -1e+30  ;;  %v181_v1 = vsel %vm180_vm9, %v176_v53, 0.0 }
 0x357   :  { %186 = vmax.xlane.f32.xlu0 %v185_v55  ;;  %v203_v56 = vadd.f32 %v202_v54, %v185_v55 }
 0x359   :  { %204 = vmax.xlane.f32.xlu2 %v203_v56 }
 0x3ca   :  { %v187_v57 = vpop.xlane.xlu0 %186 }
 0x3cb   :  { %v188_v58 = vsub.f32 %v185_v55, %v187_v57 }
 0x3cc   :  { %v205_v59 = vpop.xlane.xlu2 %204 }
 0x3cd   :  { %v189_v60 = vmul.f32 1.442695, %v188_v58  ;;  %vm206_vm8 = vcmp.eq.f32.partialorder %v203_v56, %v205_v59 }
 0x3ce   :  { %v207_v61 = vsel %vm206_vm8, %v389_v50, 128 }
 0x3cf   :  { %281 = vpow2.f32 %v189_v60  ;;  %v209_v62 = vshra.s32 %v207_v61, 16  ;;  %v208_v2 = vand.u32 65535, %v207_v61 }
 0x3d1   :  { %v211_v63 = vcvt.s32.f32 %v209_v62  ;;  %v210_v4 = vcvt.s32.f32 %v208_v2 }
 0x3d3   :  { %212 = vmin.xlane.f32.xlu1 %v211_v63 }
 0x3d5   :  { %v282_v0 = vpop.eup %281 }
 0x3d6   :  { %191 = vadd.xlane.f32.xlu2 %v282_v0 }
 0x3db   :  { %182 = vadd.xlane.f32.xlu1 %v181_v1 }
 0x446   :  { %v213_v3 = vpop.xlane.xlu1 %212 }
 0x447   :  { %vm214_vm10 = vcmp.eq.f32.partialorder %v211_v63, %v213_v3  ;;  %v219_v13 = vcvt.f32.s32 %v213_v3 }
 0x448   :  { %v215_v5 = vsel %vm214_vm10, %v210_v4, inf }
 0x449   :  { %216 = vmin.xlane.f32.xlu2 %v215_v5  ;;  %v192_v6 = vpop.xlane.xlu2 %191  ;;  %v220_v15 = vshll.u32 %v219_v13, 16 }
 0x44a   :  { %283 = vlog2.f32 %v192_v6 }
 0x44e   :  { %v183_v26 = vpop.xlane.xlu1 %182 }
 0x450   :  { %v284_v7 = vpop.eup %283 }
 0x451   :  { %v194_v8 = vmul.f32 0.6931472, %v284_v7 }
 0x453   :  { %v195_v9 = vsub.f32 %v188_v58, %v194_v8 }
 0x455   :  { %v196_v10 = vmul.f32 1.442695, %v195_v9 }
 0x457   :  { %285 = vpow2.f32 %v196_v10 }
 0x45d   :  { %v286_v11 = vpop.eup %285 }
 0x45e   :  { %v198_v12 = vmul.f32 %v286_v11, %v195_v9 }
 0x460   :  { %199 = vadd.xlane.f32.xlu0 %v198_v12 }
 0x4bc   :  { %v217_v14 = vpop.xlane.xlu2 %216 }
 0x4bd   :  { %v218_v16 = vcvt.f32.s32 %v217_v14 }
 0x4bf   :  { %v221_v17 = vadd.s32 %v220_v15, %v218_v16 }
 0x4c1   :  { %vm222_vm11 = vcmp.eq.s32.totalorder %v389_v50, %v221_v17  ;;  %v228_v22 = vcvt.s32.f32 %v221_v17 }
 0x4c2   :  { %v263_v19 = vsel %vm222_vm11, 1.0, %v346_v18 }
 0x4c3   :  { %v225_v20 = vmul.f32 %v263_v19, %v195_v9  ;;  %v233_v24 = vsel %vm232_vm12, %v228_v22, 0.0 }
 0x4c5   :  { %226 = vadd.xlane.f32.xlu2 %v225_v20 }
 0x4d3   :  { %v200_v21 = vpop.xlane.xlu0 %199 }
 0x4d4   :  { %v201_v23 = vsub.f32 0.0, %v200_v21 }
 0x4d6   :  { %v234_v25 = vsel %vm231_vm13, %v201_v23, %v233_v24 }
 0x4d7   :  { %v235_v28 = vsel %vm230_vm14, %v183_v26, %v234_v25 }
 0x538   :  { %v227_v27 = vpop.xlane.xlu2 %226 }
 0x539   :  { %v236_v29 = vsel %vm229_vm15, %v227_v27, %v235_v28 }
 0x53a   :  { %237 = vst [vmem:[%s412_s4] sm:$0xff] %v236_v29 }
 0x53b   :  { %337 = dma.done.wait [#allocation4], 128  }
 0x53c   :  { %338 = vsyncadd [#allocation4], 4294967168 }
 0x53d   :  { %257 = vsyncpa [#allocation3], 1 }
 0x53e   :  { %258 = vsyncpa [#allocation4], 1 }

</bundles_post_ra>
